<compile_context>
chip_gen: v5e
topology: v5e:2x2
jax: 0.10.0
libtpu: 0.0.40
codegen_flags: <defaults>
</compile_context>

<pallas_src>
import jax
import jax.numpy as jnp
from jax.experimental import pallas as pl
from jax.experimental.pallas import tpu as pltpu

L = 260              # sequence length (260 // 5 == 52 == Linear in_features)
K = 7                # conv kernel size
PAD = K // 2         # 'same' padding for odd kernel
POOL = 5
L_POOL = L // POOL   # 52
HIDDEN = 32
NUM_CLASSES = 4
MAX_TB = 1024        # batch tile (rows per grid step); raise vmem_limit_bytes beyond ~2048

# Conv-output column blocks (lane-tile aligned) and the x window feeding each:
#   (col_lo, col_hi, x_lo, x_hi)  ->  ((0,128,0,131), (128,256,125,259), (256,260,253,260))
_COL_SPLITS = (0, 128, 256, L)
_BLOCKS = tuple(
    (a, b, max(0, a - PAD), min(L, b - 1 + PAD) + 1)
    for a, b in zip(_COL_SPLITS[:-1], _COL_SPLITS[1:]))


def cnn1d_kernel(conv_b_ref, x_ref,
                 band0_ref, band1_ref, band2_ref,
                 wf0_ref, wf1_ref, wf2_ref,
                 b1_ref, w2_ref, b2_ref, out_ref):
    # (TB, L) tile; cast once to bf16 for the MXU (accumulation stays f32).
    xb = x_ref[...].astype(jnp.bfloat16)
    cb = conv_b_ref[0]                                        # conv bias scalar (SMEM)

    band_refs = (band0_ref, band1_ref, band2_ref)
    wf_refs = (wf0_ref, wf1_ref, wf2_ref)

    # Band-blocked Conv1d + ReLU, fused with AvgPool(5,5)+Linear(52,32):
    #   h = sum_blocks relu(x_window @ band + cb) @ w_fused[block_rows]
    h = None
    for (c_lo, c_hi, x_lo, x_hi), band_ref, wf_ref in zip(_BLOCKS, band_refs, wf_refs):
        c = jnp.dot(xb[:, x_lo:x_hi], band_ref[...],
                    preferred_element_type=jnp.float32)       # (TB, c_hi-c_lo)
        c = jnp.maximum(c + cb, 0.0).astype(jnp.bfloat16)     # conv bias + ReLU
        part = jnp.dot(c, wf_ref[...], preferred_element_type=jnp.float32)
        h = part if h is None else h + part

    h = jnp.maximum(h + b1_ref[...], 0.0)                     # Linear(52,32) bias + ReLU

    # Output head: Linear(32, num_classes).
    logits = jnp.dot(h.astype(jnp.bfloat16), w2_ref[...],
                     preferred_element_type=jnp.float32) + b2_ref[...]

    # Softmax over classes (PyTorch dim=1 == last axis of (B, C)); exact
    # reciprocal for parity with the reference (cost on (TB,1) is negligible).
    m = jnp.max(logits, axis=-1, keepdims=True)
    e = jnp.exp(logits - m)
    inv = pl.reciprocal(jnp.sum(e, axis=-1, keepdims=True), approx=False)
    out_ref[...] = e * inv


def init_params(key, num_classes=NUM_CLASSES):
    """Deterministic synthetic parameters matching the PyTorch module's shapes."""
    ks = jax.random.split(key, 6)
    conv_w = jax.random.normal(ks[0], (K,), jnp.float32) * (1.0 / K) ** 0.5   # (1,1,7) squeezed
    conv_b = jax.random.normal(ks[1], (1,), jnp.float32) * 0.1
    w1 = jax.random.normal(ks[2], (HIDDEN, L_POOL), jnp.float32) * (1.0 / L_POOL) ** 0.5
    b1 = jax.random.normal(ks[3], (HIDDEN,), jnp.float32) * 0.1
    w2 = jax.random.normal(ks[4], (num_classes, HIDDEN), jnp.float32) * (1.0 / HIDDEN) ** 0.5
    b2 = jax.random.normal(ks[5], (num_classes,), jnp.float32) * 0.1
    return dict(conv_w=conv_w, conv_b=conv_b, w1=w1, b1=b1, w2=w2, b2=b2)


def cnn1d_forward(x, params):
    """x: (B, 1, L), PyTorch NCL layout with one input channel (f32 or bf16)."""
    assert x.shape[1] == 1 and x.shape[2] == L
    B = x.shape[0]
    num_classes = params["w2"].shape[0]

    # Stream x in the caller's dtype (pass bf16 upstream to halve the HBM read).
    x2 = x.reshape(B, L)

    # Batch tile: multiple of 8 sublanes; pick TB so there are >=2 grid steps
    # whenever B allows, so megacore ("parallel") sharding has work for both TCs.
    half = (B + 1) // 2
    TB = max(8, min(MAX_TB, ((half + 7) // 8) * 8))
    B_pad = ((B + TB - 1) // TB) * TB
    if B_pad != B:
        x2 = jnp.pad(x2, ((0, B_pad - B), (0, 0)))            # pad batch rows only

    # Banded Toeplitz conv matrix (f32):  convmat[r, c] = w[r - c + PAD] inside
    # the band |r - c| <= PAD, else 0, so (x @ convmat)[:, c] = sum_k w[k] *
    # x[:, c + k - PAD] with zero 'same' pad — PyTorch Conv1d cross-correlation.
    conv_w = params["conv_w"].astype(jnp.float32)
    convmat = sum(conv_w[k] * jnp.eye(L, dtype=jnp.float32, k=PAD - k) for k in range(K))

    # Fuse AvgPool1d(5,5) with Linear(52,32): relu(conv) @ w_fused == hidden1(pool(relu(conv))).
    pool_mat = jnp.repeat(jnp.eye(L_POOL, dtype=jnp.float32), POOL, axis=0) / POOL
    w_fused = pool_mat @ params["w1"].T.astype(jnp.float32)   # (260, 32)

    # Exact band slices of the Toeplitz matrix + matching w_fused row blocks (bf16).
    bands = [convmat[xl:xh, cl:ch].astype(jnp.bfloat16) for (cl, ch, xl, xh) in _BLOCKS]
    wfs = [w_fused[cl:ch, :].astype(jnp.bfloat16) for (cl, ch, _, _) in _BLOCKS]

    b1 = params["b1"].reshape(1, HIDDEN).astype(jnp.float32)
    w2t = params["w2"].T.astype(jnp.bfloat16)                 # (32, C)
    b2 = params["b2"].reshape(1, num_classes).astype(jnp.float32)

    def resident(shape):                                      # VMEM-resident weight spec
        return pl.BlockSpec(shape, lambda i: (0, 0))

    grid = (B_pad // TB,)
    out = pl.pallas_call(
        cnn1d_kernel,
        out_shape=jax.ShapeDtypeStruct((B_pad, num_classes), jnp.float32),
        grid=grid,
        in_specs=[
            pl.BlockSpec(memory_space=pltpu.MemorySpace.SMEM),     # conv bias (scalar)
            pl.BlockSpec((TB, L), lambda i: (i, 0)),               # x tile (streamed, double-buffered)
            resident(bands[0].shape),                              # banded conv weights (resident)
            resident(bands[1].shape),
            resident(bands[2].shape),
            resident(wfs[0].shape),                                # fused pool+W1 blocks (resident)
            resident(wfs[1].shape),
            resident(wfs[2].shape),
            resident((1, HIDDEN)),                                 # b1
            resident((HIDDEN, num_classes)),                       # W2^T
            resident((1, num_classes)),                            # b2
        ],
        out_specs=pl.BlockSpec((TB, num_classes), lambda i: (i, 0)),
        compiler_params=pltpu.CompilerParams(
            dimension_semantics=("parallel",)),                    # megacore on v7x
    )(params["conv_b"].astype(jnp.float32), x2, *bands, *wfs, b1, w2t, b2)

    return out[:B]


def cnn1d_reference(x, params):
    """Pure-JAX f32 reference matching the PyTorch forward."""
    B = x.shape[0]
    xs = x.reshape(B, L).astype(jnp.float32)
    xpad = jnp.pad(xs, ((0, 0), (PAD, PAD)))
    conv = sum(params["conv_w"][k] * xpad[:, k:k + L] for k in range(K)) + params["conv_b"][0]
    conv = jnp.maximum(conv, 0.0)
    pooled = conv.reshape(B, L_POOL, POOL).mean(axis=-1)
    h = jnp.maximum(pooled @ params["w1"].T + params["b1"], 0.0)
    logits = h @ params["w2"].T + params["b2"]
    return jax.nn.softmax(logits, axis=1)


if __name__ == "__main__":
    key = jax.random.PRNGKey(0)
    k_x, k_p = jax.random.split(key)
    B = 2
    x = jax.random.normal(k_x, (B, 1, L), jnp.float32)
    params = init_params(k_p)

    out = jax.jit(cnn1d_forward)(x, params)
    out = jax.block_until_ready(out)
    ref = cnn1d_reference(x, params)

    assert out.shape == (B, NUM_CLASSES)
    assert bool(jnp.all(jnp.isfinite(out)))
    assert bool(jnp.allclose(jnp.sum(out, axis=1), 1.0, atol=1e-3))
    # bf16 MXU operands vs f32 reference: tolerate ~1e-2-level differences.
    assert bool(jnp.max(jnp.abs(out - ref)) < 5e-2)
    print("KERNEL_OK")
</pallas_src>

<mosaic_0001>
module attributes {stable_mosaic.version = 11 : i64} {
  func.func @cnn1d_kernel(%arg0: i32, %arg1: memref<1xf32, #tpu.memory_space<smem>>, %arg2: memref<8x260xf32, #tpu.memory_space<vmem>>, %arg3: memref<131x128xbf16, #tpu.memory_space<vmem>>, %arg4: memref<134x128xbf16, #tpu.memory_space<vmem>>, %arg5: memref<7x4xbf16, #tpu.memory_space<vmem>>, %arg6: memref<128x32xbf16, #tpu.memory_space<vmem>>, %arg7: memref<128x32xbf16, #tpu.memory_space<vmem>>, %arg8: memref<4x32xbf16, #tpu.memory_space<vmem>>, %arg9: memref<1x32xf32, #tpu.memory_space<vmem>>, %arg10: memref<32x4xbf16, #tpu.memory_space<vmem>>, %arg11: memref<1x4xf32, #tpu.memory_space<vmem>>, %arg12: memref<8x4xf32, #tpu.memory_space<vmem>>) attributes {dimension_semantics = [#tpu.dimension_semantics<parallel>], iteration_bounds = array<i64: 1>, scalar_prefetch = 0 : i64, scratch_operands = 0 : i64, tpu.core_type = #tpu.core_type<tc>, window_params = [{transform_indices = @transform_0, window_bounds = array<i64: 1>}, {transform_indices = @transform_1, window_bounds = array<i64: 8, 260>}, {pipeline_mode = #tpu.pipeline_mode<synchronous>, transform_indices = @transform_2, window_bounds = array<i64: 131, 128>}, {pipeline_mode = #tpu.pipeline_mode<synchronous>, transform_indices = @transform_3, window_bounds = array<i64: 134, 128>}, {pipeline_mode = #tpu.pipeline_mode<synchronous>, transform_indices = @transform_4, window_bounds = array<i64: 7, 4>}, {pipeline_mode = #tpu.pipeline_mode<synchronous>, transform_indices = @transform_5, window_bounds = array<i64: 128, 32>}, {pipeline_mode = #tpu.pipeline_mode<synchronous>, transform_indices = @transform_6, window_bounds = array<i64: 128, 32>}, {pipeline_mode = #tpu.pipeline_mode<synchronous>, transform_indices = @transform_7, window_bounds = array<i64: 4, 32>}, {pipeline_mode = #tpu.pipeline_mode<synchronous>, transform_indices = @transform_8, window_bounds = array<i64: 1, 32>}, {pipeline_mode = #tpu.pipeline_mode<synchronous>, transform_indices = @transform_9, window_bounds = array<i64: 32, 4>}, {pipeline_mode = #tpu.pipeline_mode<synchronous>, transform_indices = @transform_10, window_bounds = array<i64: 1, 4>}, {transform_indices = @transform_11, window_bounds = array<i64: 8, 4>}]} {
    %c0 = arith.constant 0 : index
    %c0_0 = arith.constant 0 : index
    %0 = vector.load %arg2[%c0, %c0_0] : memref<8x260xf32, #tpu.memory_space<vmem>>, vector<8x260xf32>
    %1 = arith.truncf %0 : vector<8x260xf32> to vector<8x260xbf16>
    %c0_1 = arith.constant 0 : index
    %2 = memref.load %arg1[%c0_1] : memref<1xf32, #tpu.memory_space<smem>>
    %3 = vector.extract_strided_slice %1 {offsets = [0, 0], sizes = [8, 131], strides = [1, 1]} : vector<8x260xbf16> to vector<8x131xbf16>
    %c0_2 = arith.constant 0 : index
    %c0_3 = arith.constant 0 : index
    %4 = vector.load %arg3[%c0_2, %c0_3] : memref<131x128xbf16, #tpu.memory_space<vmem>>, vector<131x128xbf16>
    %cst = arith.constant dense<0.000000e+00> : vector<8x128xf32>
    %5 = tpu.matmul %3, %4, %cst {dimension_numbers = #tpu.dot_dimension_numbers<[1], [0], [0], [1], [0, 0, 1, 1], [], []>} : vector<8x131xbf16>, vector<131x128xbf16>, vector<8x128xf32> -> vector<8x128xf32>
    %6 = vector.broadcast %2 : f32 to vector<8x128xf32>
    %7 = arith.addf %5, %6 : vector<8x128xf32>
    %cst_4 = arith.constant 0.000000e+00 : f32
    %8 = vector.broadcast %cst_4 : f32 to vector<8x128xf32>
    %9 = arith.maximumf %7, %8 : vector<8x128xf32>
    %10 = arith.truncf %9 : vector<8x128xf32> to vector<8x128xbf16>
    %c0_5 = arith.constant 0 : index
    %c0_6 = arith.constant 0 : index
    %11 = vector.load %arg6[%c0_5, %c0_6] : memref<128x32xbf16, #tpu.memory_space<vmem>>, vector<128x32xbf16>
    %cst_7 = arith.constant dense<0.000000e+00> : vector<8x32xf32>
    %12 = tpu.matmul %10, %11, %cst_7 {dimension_numbers = #tpu.dot_dimension_numbers<[1], [0], [0], [1], [0, 0, 1, 1], [], []>} : vector<8x128xbf16>, vector<128x32xbf16>, vector<8x32xf32> -> vector<8x32xf32>
    %13 = vector.extract_strided_slice %1 {offsets = [0, 125], sizes = [8, 134], strides = [1, 1]} : vector<8x260xbf16> to vector<8x134xbf16>
    %c0_8 = arith.constant 0 : index
    %c0_9 = arith.constant 0 : index
    %14 = vector.load %arg4[%c0_8, %c0_9] : memref<134x128xbf16, #tpu.memory_space<vmem>>, vector<134x128xbf16>
    %cst_10 = arith.constant dense<0.000000e+00> : vector<8x128xf32>
    %15 = tpu.matmul %13, %14, %cst_10 {dimension_numbers = #tpu.dot_dimension_numbers<[1], [0], [0], [1], [0, 0, 1, 1], [], []>} : vector<8x134xbf16>, vector<134x128xbf16>, vector<8x128xf32> -> vector<8x128xf32>
    %16 = vector.broadcast %2 : f32 to vector<8x128xf32>
    %17 = arith.addf %15, %16 : vector<8x128xf32>
    %cst_11 = arith.constant 0.000000e+00 : f32
    %18 = vector.broadcast %cst_11 : f32 to vector<8x128xf32>
    %19 = arith.maximumf %17, %18 : vector<8x128xf32>
    %20 = arith.truncf %19 : vector<8x128xf32> to vector<8x128xbf16>
    %c0_12 = arith.constant 0 : index
    %c0_13 = arith.constant 0 : index
    %21 = vector.load %arg7[%c0_12, %c0_13] : memref<128x32xbf16, #tpu.memory_space<vmem>>, vector<128x32xbf16>
    %cst_14 = arith.constant dense<0.000000e+00> : vector<8x32xf32>
    %22 = tpu.matmul %20, %21, %cst_14 {dimension_numbers = #tpu.dot_dimension_numbers<[1], [0], [0], [1], [0, 0, 1, 1], [], []>} : vector<8x128xbf16>, vector<128x32xbf16>, vector<8x32xf32> -> vector<8x32xf32>
    %23 = arith.addf %12, %22 : vector<8x32xf32>
    %24 = vector.extract_strided_slice %1 {offsets = [0, 253], sizes = [8, 7], strides = [1, 1]} : vector<8x260xbf16> to vector<8x7xbf16>
    %c0_15 = arith.constant 0 : index
    %c0_16 = arith.constant 0 : index
    %25 = vector.load %arg5[%c0_15, %c0_16] : memref<7x4xbf16, #tpu.memory_space<vmem>>, vector<7x4xbf16>
    %cst_17 = arith.constant dense<0.000000e+00> : vector<8x4xf32>
    %26 = tpu.matmul %24, %25, %cst_17 {dimension_numbers = #tpu.dot_dimension_numbers<[1], [0], [0], [1], [0, 0, 1, 1], [], []>} : vector<8x7xbf16>, vector<7x4xbf16>, vector<8x4xf32> -> vector<8x4xf32>
    %27 = vector.broadcast %2 : f32 to vector<8x4xf32>
    %28 = arith.addf %26, %27 : vector<8x4xf32>
    %cst_18 = arith.constant 0.000000e+00 : f32
    %29 = vector.broadcast %cst_18 : f32 to vector<8x4xf32>
    %30 = arith.maximumf %28, %29 : vector<8x4xf32>
    %31 = arith.truncf %30 : vector<8x4xf32> to vector<8x4xbf16>
    %c0_19 = arith.constant 0 : index
    %c0_20 = arith.constant 0 : index
    %32 = vector.load %arg8[%c0_19, %c0_20] : memref<4x32xbf16, #tpu.memory_space<vmem>>, vector<4x32xbf16>
    %cst_21 = arith.constant dense<0.000000e+00> : vector<8x32xf32>
    %33 = tpu.matmul %31, %32, %cst_21 {dimension_numbers = #tpu.dot_dimension_numbers<[1], [0], [0], [1], [0, 0, 1, 1], [], []>} : vector<8x4xbf16>, vector<4x32xbf16>, vector<8x32xf32> -> vector<8x32xf32>
    %34 = arith.addf %23, %33 : vector<8x32xf32>
    %c0_22 = arith.constant 0 : index
    %c0_23 = arith.constant 0 : index
    %35 = vector.load %arg9[%c0_22, %c0_23] : memref<1x32xf32, #tpu.memory_space<vmem>>, vector<1x32xf32>
    %36 = vector.broadcast %35 : vector<1x32xf32> to vector<8x32xf32>
    %37 = arith.addf %34, %36 : vector<8x32xf32>
    %cst_24 = arith.constant 0.000000e+00 : f32
    %38 = vector.broadcast %cst_24 : f32 to vector<8x32xf32>
    %39 = arith.maximumf %37, %38 : vector<8x32xf32>
    %40 = arith.truncf %39 : vector<8x32xf32> to vector<8x32xbf16>
    %c0_25 = arith.constant 0 : index
    %c0_26 = arith.constant 0 : index
    %41 = vector.load %arg10[%c0_25, %c0_26] : memref<32x4xbf16, #tpu.memory_space<vmem>>, vector<32x4xbf16>
    %cst_27 = arith.constant dense<0.000000e+00> : vector<8x4xf32>
    %42 = tpu.matmul %40, %41, %cst_27 {dimension_numbers = #tpu.dot_dimension_numbers<[1], [0], [0], [1], [0, 0, 1, 1], [], []>} : vector<8x32xbf16>, vector<32x4xbf16>, vector<8x4xf32> -> vector<8x4xf32>
    %c0_28 = arith.constant 0 : index
    %c0_29 = arith.constant 0 : index
    %43 = vector.load %arg11[%c0_28, %c0_29] : memref<1x4xf32, #tpu.memory_space<vmem>>, vector<1x4xf32>
    %44 = vector.broadcast %43 : vector<1x4xf32> to vector<8x4xf32>
    %45 = arith.addf %42, %44 : vector<8x4xf32>
    %cst_30 = arith.constant dense<0xFF800000> : vector<8xf32>
    %46 = vector.multi_reduction <maximumf>, %45, %cst_30 [1] : vector<8x4xf32> to vector<8xf32>
    %47 = vector.shape_cast %46 : vector<8xf32> to vector<8x1xf32>
    %48 = vector.broadcast %47 : vector<8x1xf32> to vector<8x4xf32>
    %49 = arith.subf %45, %48 : vector<8x4xf32>
    %50 = math.exp %49 : vector<8x4xf32>
    %cst_31 = arith.constant dense<0.000000e+00> : vector<8xf32>
    %51 = vector.multi_reduction <add>, %50, %cst_31 [1] : vector<8x4xf32> to vector<8xf32>
    %52 = vector.shape_cast %51 : vector<8xf32> to vector<8x1xf32>
    %53 = tpu.reciprocal %52 : vector<8x1xf32> -> vector<8x1xf32>
    %54 = vector.broadcast %53 : vector<8x1xf32> to vector<8x4xf32>
    %55 = arith.mulf %50, %54 : vector<8x4xf32>
    %c0_32 = arith.constant 0 : index
    %c0_33 = arith.constant 0 : index
    %56 = vector.load %arg12[%c0_32, %c0_33] : memref<8x4xf32, #tpu.memory_space<vmem>>, vector<8x4xf32>
    tpu.vector_store %arg12[%c0_32, %c0_33], %55 {strides = array<i32>} : memref<8x4xf32, #tpu.memory_space<vmem>>, vector<8x4xf32>,
    return
  }
  func.func @transform_0(%arg0: i32) -> i32 {
    %c0_i32 = arith.constant 0 : i32
    %c0_i32_0 = arith.constant 0 : i32
    return %c0_i32 : i32
  }
  func.func @transform_1(%arg0: i32) -> (i32, i32) {
    %c0_i32 = arith.constant 0 : i32
    %c0_i32_0 = arith.constant 0 : i32
    return %arg0, %c0_i32 : i32, i32
  }
  func.func @transform_2(%arg0: i32) -> (i32, i32) {
    %c0_i32 = arith.constant 0 : i32
    %c0_i32_0 = arith.constant 0 : i32
    %c0_i32_1 = arith.constant 0 : i32
    return %c0_i32, %c0_i32_0 : i32, i32
  }
  func.func @transform_3(%arg0: i32) -> (i32, i32) {
    %c0_i32 = arith.constant 0 : i32
    %c0_i32_0 = arith.constant 0 : i32
    %c0_i32_1 = arith.constant 0 : i32
    return %c0_i32, %c0_i32_0 : i32, i32
  }
  func.func @transform_4(%arg0: i32) -> (i32, i32) {
    %c0_i32 = arith.constant 0 : i32
    %c0_i32_0 = arith.constant 0 : i32
    %c0_i32_1 = arith.constant 0 : i32
    return %c0_i32, %c0_i32_0 : i32, i32
  }
  func.func @transform_5(%arg0: i32) -> (i32, i32) {
    %c0_i32 = arith.constant 0 : i32
    %c0_i32_0 = arith.constant 0 : i32
    %c0_i32_1 = arith.constant 0 : i32
    return %c0_i32, %c0_i32_0 : i32, i32
  }
  func.func @transform_6(%arg0: i32) -> (i32, i32) {
    %c0_i32 = arith.constant 0 : i32
    %c0_i32_0 = arith.constant 0 : i32
    %c0_i32_1 = arith.constant 0 : i32
    return %c0_i32, %c0_i32_0 : i32, i32
  }
  func.func @transform_7(%arg0: i32) -> (i32, i32) {
    %c0_i32 = arith.constant 0 : i32
    %c0_i32_0 = arith.constant 0 : i32
    %c0_i32_1 = arith.constant 0 : i32
    return %c0_i32, %c0_i32_0 : i32, i32
  }
  func.func @transform_8(%arg0: i32) -> (i32, i32) {
    %c0_i32 = arith.constant 0 : i32
    %c0_i32_0 = arith.constant 0 : i32
    %c0_i32_1 = arith.constant 0 : i32
    return %c0_i32, %c0_i32_0 : i32, i32
  }
  func.func @transform_9(%arg0: i32) -> (i32, i32) {
    %c0_i32 = arith.constant 0 : i32
    %c0_i32_0 = arith.constant 0 : i32
    %c0_i32_1 = arith.constant 0 : i32
    return %c0_i32, %c0_i32_0 : i32, i32
  }
  func.func @transform_10(%arg0: i32) -> (i32, i32) {
    %c0_i32 = arith.constant 0 : i32
    %c0_i32_0 = arith.constant 0 : i32
    %c0_i32_1 = arith.constant 0 : i32
    return %c0_i32, %c0_i32_0 : i32, i32
  }
  func.func @transform_11(%arg0: i32) -> (i32, i32) {
    %c0_i32 = arith.constant 0 : i32
    %c0_i32_0 = arith.constant 0 : i32
    return %arg0, %c0_i32 : i32, i32
  }
}

</mosaic_0001>

<bundles_post_ra>
// kernel: cnn1d_forward.1
= control target key start
LH: loop header
LB: loop body
LE: loop exit
PB: predicated region body
PF: predicated region fallthrough
CT: control target
= control target key end

     0   :  { %vm125_vm0 = vcmask 1040384   ;;  %vm126_vm1 = vcmask 1041408   ;;  %v734_v9 = vmov 65535   ;;  %s735_s13 = smov 3   ;;  %vm121_vm2 = vcmask 23552   ;;  %s942_s1 = inlined_call_operand.vmem [shape: f32[8,260], index: 1, kind: input, shape index: {}]   ;;  %s943_s2 = inlined_call_operand.vmem [shape: bf16[131,128], index: 2, kind: input, shape index: {}]   ;;  %s944_s3 = inlined_call_operand.vmem [shape: bf16[134,128], index: 3, kind: input, shape index: {}]   ;;  %s945_s4 = inlined_call_operand.vmem [shape: bf16[7,4], index: 4, kind: input, shape index: {}]   ;;  %s946_s5 = inlined_call_operand.vmem [shape: bf16[128,32], index: 5, kind: input, shape index: {}]   ;;  %s947_s6 = inlined_call_operand.vmem [shape: bf16[128,32], index: 6, kind: input, shape index: {}]   ;;  %s948_s7 = inlined_call_operand.vmem [shape: bf16[4,32], index: 7, kind: input, shape index: {}]   ;;  %s949_s0 = inlined_call_operand.<no memory space> [shape: f32[1], index: 0, kind: input, shape index: {}]   ;;  %s950_s8 = inlined_call_operand.vmem [shape: f32[1,32], index: 8, kind: input, shape index: {}]   ;;  %s951_s9 = inlined_call_operand.vmem [shape: bf16[32,4], index: 9, kind: input, shape index: {}]   ;;  %s952_s10 = inlined_call_operand.vmem [shape: f32[1,4], index: 10, kind: input, shape index: {}]   ;;  %s953_s11 = inlined_call_operand.vmem [shape: f32[8,4], index: 11, kind: output, shape index: {}]  }
   0x1   :  { %v40_v0 = vld [vmem:[%s942_s1] sm:$0xff]  ;;  %v41_v1 = vld [vmem:[%s942_s1 + $0x8] sm:$0xff]  ;;  %v42_v2 = vld [vmem:[%s942_s1 + $0x10] sm:$0xff]  ;;  %v127_v10 = vsel %vm125_vm0, 4294967295, %v734_v9  ;;  %vm261_vm3 = vcmask 1042432   ;;  %vm435_vm4 = vcmask 1043456  }
   0x2   :  { %v43_v3 = vpack.c.bf16 %v41_v1, %v40_v0  ;;  %v44_v4 = vpack.c.bf16 %v42_v2, %v42_v2  ;;  %v699_v5 = vld [vmem:[%s943_s2 + $0x38] sm:$0xff]  ;;  %v698_v11 = vld [vmem:[%s943_s2 + $0x30] sm:$0xff]  ;;  %v62_v12 = vld [vmem:[%s943_s2 + $0x40] sm:$0x3]  ;;  %v128_v17 = vsel %vm126_vm1, %v127_v10, 0  ;;  %v436_v30 = vsel %vm261_vm3, 4294967295, %v734_v9 }
   0x3   :  { %132 = vmatpush.bf16.msra.mxu0 %v699_v5  ;;  %v715_v8 = vld [vmem:[%s944_s3 + $0x38] sm:$0xff]  ;;  %v714_v15 = vld [vmem:[%s944_s3 + $0x30] sm:$0xff]  ;;  %v103_v16 = vunpack.c.l.b16 %v62_v12  ;;  %v697_v20 = vld [vmem:[%s943_s2 + $0x28] sm:$0xff]  ;;  %v437_v33 = vsel %vm435_vm4, %v436_v30, 0  ;;  %vm257_vm5 = vcmask 48128   ;;  %vm432_vm6 = vcmask 56320  }
   0x4   :  { %v65_v6 = vunpack.c.l.b16 %v43_v3  ;;  %v194_v7 = vunpack.c.l.b16 %v44_v4  ;;  %265 = vmatpush.bf16.msra.mxu2 %v715_v8  ;;  %v66_v18 = vunpack.c.h.b16 %v43_v3  ;;  %v713_v21 = vld [vmem:[%s944_s3 + $0x28] sm:$0xff]  ;;  %v696_v24 = vld [vmem:[%s943_s2 + $0x20] sm:$0xff]  ;;  %v695_v26 = vld [vmem:[%s943_s2 + $0x18] sm:$0xff]  ;;  %v63_v0 = vstv %s949_s0 }
   0x5   :  { %v112_v19 = vpack.c.b16 %v103_v16, %v103_v16  ;;  %v712_v25 = vld [vmem:[%s944_s3 + $0x20] sm:$0xff]  ;;  %v711_v27 = vld [vmem:[%s944_s3 + $0x18] sm:$0xff]  ;;  %v694_v28 = vld [vmem:[%s943_s2 + $0x10] sm:$0xff]  ;;  %vm457_vm7 = vcmask 31744   ;;  %vm505_vm8 = vcmask 261120  }
   0x6   :  { %v67_v13 = vpack.c.b16 %v65_v6, %v65_v6  ;;  %v195_v14 = vpack.c.b16 %v194_v7, %v194_v7  ;;  %v68_v23 = vpack.c.b16 %v66_v18, %v66_v18  ;;  %v710_v29 = vld [vmem:[%s944_s3 + $0x10] sm:$0xff]  ;;  %v693_v31 = vld [vmem:[%s943_s2 + $0x8] sm:$0xff]  ;;  %v431_v32 = vld [vmem:[%s945_s4] sm:$0xf] }
   0x7   :  { %133 = vmatpush.bf16.msra.mxu0 %v698_v11  ;;  %v130_v22 = vand.u32 %v128_v17, %v112_v19  ;;  %v692_v34 = vld [vmem:[%s943_s2] sm:$0xff]  ;;  %v439_v35 = vand.u32 %v437_v33, %v431_v32  ;;  %v709_v36 = vld [vmem:[%s944_s3 + $0x8] sm:$0xff]  ;;  %v707_v42 = vld [vmem:[%s946_s5 + $0x38] sm:$0xff] }
   0x8   :  { %196 = vrot.lane.b32.xlu0 %v67_v13, %s735_s13  ;;  %200 = vrot.lane.b32.xlu1 %v195_v14, %s735_s13  ;;  %v192_v37 = vld [vmem:[%s944_s3 + $0x40] sm:$0x7]  ;;  %v706_v43 = vld [vmem:[%s946_s5 + $0x30] sm:$0xff] }
   0x9   :  { %266 = vmatpush.bf16.msra.mxu2 %v714_v15  ;;  %152 = vmatpush.bf16.msra.mxu1 %v130_v22  ;;  %v239_v38 = vunpack.c.l.b16 %v192_v37  ;;  %v708_v39 = vld [vmem:[%s944_s3] sm:$0xff]  ;;  %v705_v44 = vld [vmem:[%s946_s5 + $0x28] sm:$0xff]  ;;  %v703_v46 = vld [vmem:[%s946_s5 + $0x18] sm:$0xff] }
   0xa   :  { %v704_v45 = vld [vmem:[%s946_s5 + $0x20] sm:$0xff]  ;;  %v702_v47 = vld [vmem:[%s946_s5 + $0x10] sm:$0xff]  ;;  %v701_v53 = vld [vmem:[%s946_s5 + $0x8] sm:$0xff] }
   0xb   :  { %134 = vmatpush.bf16.msra.mxu0 %v697_v20  ;;  %v248_v40 = vpack.c.b16 %v239_v38, %v239_v38  ;;  %v723_v54 = vld [vmem:[%s947_s6 + $0x38] sm:$0xff]  ;;  %v700_v55 = vld [vmem:[%s946_s5] sm:$0xff]  ;;  %v722_v56 = vld [vmem:[%s947_s6 + $0x30] sm:$0xff] }
   0xc   :  { %583 = vmatmul.msk.bf16.vlgmr.msra.gmra.mxu1 %vm121_vm2, %v68_v23  ;;  %v456_v57 = vld [vmem:[%s948_s7] sm:$0x3]  ;;  %v721_v60 = vld [vmem:[%s947_s6 + $0x28] sm:$0xff]  ;;  %v719_v63 = vld [vmem:[%s947_s6 + $0x18] sm:$0xff] }
   0xd   :  { %267 = vmatpush.bf16.msra.mxu2 %v713_v21  ;;  %v263_v41 = vsel %vm261_vm3, %v248_v40, 0  ;;  %357 = vmatpush.bf16.msrb.mxu1 %v723_v54  ;;  %v462_v58 = vsel %vm126_vm1, %v456_v57, 0  ;;  %v720_v61 = vld [vmem:[%s947_s6 + $0x20] sm:$0xff]  ;;  %v718_v7 = vld [vmem:[%s947_s6 + $0x10] sm:$0xff]  ;;  %v717_v8 = vld [vmem:[%s947_s6 + $0x8] sm:$0xff] }
   0xe   :  { %285 = vmatpush.bf16.msra.mxu3 %v263_v41  ;;  %v716_v9 = vld [vmem:[%s947_s6] sm:$0xff] }
   0xf   :  { %135 = vmatpush.bf16.msra.mxu0 %v696_v24  ;;  %v728_v30 = vld [vmem:[%s950_s8] ss:$0 sm:$0xff] }
  0x10   :  { %198 = vrot.lane.b32.xlu0 %v68_v23, %s735_s13  ;;  %v725_v23 = vld [vmem:[%s951_s9 + $0x8] sm:$0xff]  ;;  %v729_v37 = vld [vmem:[%s952_s10] ss:$0 sm:$0xff] }
  0x11   :  { %268 = vmatpush.bf16.msra.mxu2 %v712_v25  ;;  %358 = vmatpush.bf16.msrb.mxu1 %v722_v56 }
  0x12   :  { %418 = vmatpush.bf16.msrb.mxu3 %v707_v42 }
  0x13   :  { %136 = vmatpush.bf16.msra.mxu0 %v695_v26  ;;  %v724_v26 = vld [vmem:[%s951_s9] sm:$0xff] }
  0x15   :  { %269 = vmatpush.bf16.msra.mxu2 %v711_v27  ;;  %359 = vmatpush.bf16.msrb.mxu1 %v721_v60 }
  0x16   :  { %419 = vmatpush.bf16.msrb.mxu3 %v706_v43 }
  0x17   :  { %137 = vmatpush.bf16.msra.mxu0 %v694_v28 }
  0x19   :  { %270 = vmatpush.bf16.msra.mxu2 %v710_v29  ;;  %360 = vmatpush.bf16.msrb.mxu1 %v720_v61 }
  0x1a   :  { %420 = vmatpush.bf16.msrb.mxu3 %v705_v44 }
  0x1b   :  { %138 = vmatpush.bf16.msra.mxu0 %v693_v31 }
  0x1d   :  { %271 = vmatpush.bf16.msra.mxu2 %v709_v36  ;;  %361 = vmatpush.bf16.msrb.mxu1 %v719_v63 }
  0x1e   :  { %421 = vmatpush.bf16.msrb.mxu3 %v704_v45 }
  0x1f   :  { %139 = vmatpush.bf16.msra.mxu0 %v692_v34 }
  0x21   :  { %272 = vmatpush.bf16.msra.mxu2 %v708_v39  ;;  %362 = vmatpush.bf16.msrb.mxu1 %v718_v7 }
  0x22   :  { %140 = vmatmul.bf16.vlgmr.msra.gmra.mxu0 %v67_v13  ;;  %422 = vmatpush.bf16.msrb.mxu3 %v703_v46 }
  0x23   :  { %448 = vmatpush.bf16.msrb.mxu0 %v439_v35 }
  0x25   :  { %471 = vmatpush.bf16.msrb.mxu2 %v462_v58  ;;  %363 = vmatpush.bf16.msrb.mxu1 %v717_v8 }
  0x26   :  { %423 = vmatpush.bf16.msrb.mxu3 %v702_v47 }
  0x29   :  { %364 = vmatpush.bf16.msrb.mxu1 %v716_v9 }
  0x2a   :  { %424 = vmatpush.bf16.msrb.mxu3 %v701_v53 }
  0x2d   :  { %515 = vmatpush.bf16.msra.mxu1 %v725_v23 }
  0x2e   :  { %425 = vmatpush.bf16.msrb.mxu3 %v700_v55 }
  0x31   :  { %516 = vmatpush.bf16.msra.mxu1 %v724_v26 }
  0x7a   :  { %v197_v48 = vpop.permute.xlu0 %196  ;;  %v201_v49 = vpop.permute.xlu1 %200 }
  0x82   :  { %v199_v50 = vpop.permute.xlu0 %198 }
  0x83   :  { %v203_v51 = vsel %vm121_vm2, %v197_v48, %v199_v50  ;;  %v204_v52 = vsel %vm121_vm2, %v199_v50, %v201_v49 }
  0x84   :  { %273 = vmatmul.bf16.vlgmr.msra.gmra.mxu2 %v203_v51  ;;  %616 = vmatmul.msk.bf16.vlgmr.msra.gmra.mxu3 %vm257_vm5, %v204_v52 }
  0x85   :  { %681 = vmatmul.msk.bf16.vlgmr.msrb.gmra.mxu0 %vm432_vm6, %v204_v52 }
  0x89   :  { %v154_v59 = vpop.f32.mrf.mxu1 }
  0x91   :  { %v156_v62 = vpop.f32.mrf.mxu1 }
  0x9f   :  { %v141_v1 = vpop.f32.mrf.mxu0 }
  0xa0   :  { %v142_v2 = vadd.f32 %v141_v1, %v63_v0 }
  0xa2   :  { %v155_v3 = vadd.f32 %v154_v59, %v142_v2 }
  0xa4   :  { %v158_v4 = vmax.f32 %v155_v3, 0.0 }
  0xa6   :  { %v159_v5 = vpack.c.bf16 %v158_v4, %v158_v4 }
  0xa7   :  { %v143_v6 = vpop.f32.mrf.mxu0 }
  0xa8   :  { %426 = vmatmul.bf16.vlgmr.msrb.gmra.mxu3 %v159_v5 }
 0x102   :  { %v450_v10 = vpop.f32.mrf.mxu0 }
 0x103   :  { %v451_v11 = vadd.f32 %v450_v10, %v63_v0 }
 0x105   :  { %v454_v12 = vmax.f32 %v451_v11, 0.0 }
 0x107   :  { %v455_v13 = vpack.c.bf16 %v454_v12, %v454_v12  ;;  %v274_v14 = vpop.f32.mrf.mxu2  ;;  %v287_v15 = vpop.f32.mrf.mxu3 }
 0x108   :  { %v275_v16 = vadd.f32 %v274_v14, %v63_v0 }
 0x109   :  { %682 = vmatmul.msk.bf16.vlgmr.msrb.gmra.mxu2 %vm457_vm7, %v455_v13 }
 0x10a   :  { %v288_v17 = vadd.f32 %v287_v15, %v275_v16  ;;  %v452_v18 = vpop.f32.mrf.mxu0 }
 0x10c   :  { %v291_v19 = vmax.f32 %v288_v17, 0.0 }
 0x10e   :  { %v292_v20 = vpack.c.bf16 %v291_v19, %v291_v19 }
 0x10f   :  { %v276_v21 = vpop.f32.mrf.mxu2  ;;  %v289_v22 = vpop.f32.mrf.mxu3 }
 0x110   :  { %365 = vmatmul.bf16.vlgmr.msrb.gmra.mxu1 %v292_v20 }
 0x12b   :  { %v427_v24 = vpop.f32.mrf.mxu3 }
 0x133   :  { %v429_v25 = vpop.f32.mrf.mxu3 }
 0x18c   :  { %v473_v27 = vpop.f32.mrf.mxu2 }
 0x18d   :  { %v366_v28 = vpop.f32.mrf.mxu1 }
 0x18e   :  { %v428_v29 = vadd.f32 %v427_v24, %v366_v28 }
 0x190   :  { %v477_v31 = vadd.f32 %v473_v27, %v428_v29 }
 0x192   :  { %v482_v32 = vadd.f32 %v728_v30, %v477_v31 }
 0x194   :  { %v483_v33 = vmax.f32 %v482_v32, 0.0  ;;  %v475_v34 = vpop.f32.mrf.mxu2 }
 0x195   :  { %v368_v35 = vpop.f32.mrf.mxu1 }
 0x196   :  { %v484_v36 = vpack.c.bf16 %v483_v33, %v483_v33 }
 0x198   :  { %691 = vmatmul.msk.bf16.vlgmr.msra.gmra.mxu1 %vm505_vm8, %v484_v36 }
 0x215   :  { %v518_v38 = vpop.f32.mrf.mxu1 }
 0x216   :  { %v519_v39 = vadd.f32 %v729_v37, %v518_v38 }
 0x218   :  { %v522_v40 = vsel %vm457_vm7, %v519_v39, -inf }
 0x219   :  { %523 = vmax.xlane.f32.xlu1 %v522_v40 }
 0x21d   :  { %v520_v41 = vpop.f32.mrf.mxu1 }
 0x28c   :  { %v524_v42 = vpop.xlane.xlu1 %523 }
 0x28d   :  { %v525_v43 = vsub.f32 %v519_v39, %v524_v42 }
 0x28f   :  { %v526_v44 = vmul.f32 1.442695, %v525_v43 }
 0x291   :  { %730 = vpow2.f32 %v526_v44 }
 0x297   :  { %v731_v45 = vpop.eup %730 }
 0x298   :  { %v528_v46 = vsel %vm457_vm7, %v731_v45, 0.0 }
 0x299   :  { %529 = vadd.xlane.f32.xlu2 %v528_v46 }
 0x30c   :  { %v530_v47 = vpop.xlane.xlu2 %529 }
 0x30d   :  { %732 = vrcp.f32 %v530_v47  ;;  %v542_v51 = vand.u32 2147483648, %v530_v47  ;;  %v540_v53 = vand.u32 2147483647, %v530_v47  ;;  %vm536_vm10 = vweird.f32 %v530_v47 }
 0x30f   :  { %v543_v55 = vor.u32 1.1754944e-38, %v542_v51  ;;  %vm541_vm12 = vcmp.eq.f32.partialorder %v540_v53, 8.507059e+37 }
 0x313   :  { %v733_v48 = vpop.eup %732 }
 0x314   :  { %v532_v49 = vmul.f32 %v733_v48, %v530_v47  ;;  %vm537_vm9 = vweird.f32 %v733_v48 }
 0x315   :  { %vm538_vm11 = vmor %vm536_vm10, %vm537_vm9 }
 0x316   :  { %v533_v50 = vsub.f32 1.0, %v532_v49 }
 0x318   :  { %v534_v52 = vmul.f32 %v733_v48, %v533_v50 }
 0x31a   :  { %v535_v54 = vadd.f32 %v733_v48, %v534_v52 }
 0x31c   :  { %v539_v56 = vsel %vm538_vm11, %v733_v48, %v535_v54 }
 0x31d   :  { %v544_v57 = vsel %vm541_vm12, %v543_v55, %v539_v56 }
 0x31e   :  { %v545_v58 = vmul.f32 %v731_v45, %v544_v57 }
 0x320   :  { %546 = vst.msk [vmem:[%s953_s11] sm:$0xff] %vm457_vm7, %v545_v58 }

</bundles_post_ra>
